<compile_context>
chip_gen: v5e
topology: v5e:2x2
jax: 0.10.0
libtpu: 0.0.40
codegen_flags: <defaults>
</compile_context>

<pallas_src>
import jax
import jax.numpy as jnp
from jax import lax
from jax.experimental import pallas as pl
from jax.experimental.pallas import tpu as pltpu

IN_DIM = 8
HIDDEN = 128
N_ACTIONS = 4
PACK_ROWS = 16  # rows 0:8 = W1, row 8 = b1, row 9 = fused head bias, rest zero


def policy_kernel(x_ref, wp_ref, wh_ref, out_ref):
    x = x_ref[...]                                     # (TB, 8)

    w1 = wp_ref[0:IN_DIM, :]                           # (8, 128)
    b1 = wp_ref[IN_DIM:IN_DIM + 1, :]                  # (1, 128)
    bh = wp_ref[IN_DIM + 1:IN_DIM + 2, :]              # (1, 128) fused head bias

    # affine1 + ReLU (MXU matmul, f32 accumulate, VPU epilogue)
    h = jnp.dot(x, w1, preferred_element_type=jnp.float32)
    h = jnp.maximum(h + b1, 0.0)                       # (TB, 128)

    # fused heads: cols 0:4 = action logits, col 4 = state value, rest zero
    heads = jnp.dot(h, wh_ref[...], preferred_element_type=jnp.float32) + bh

    # softmax restricted to the 4 real logit columns (padded cols masked out)
    lane = lax.broadcasted_iota(jnp.int32, heads.shape, 1)
    is_logit = lane < N_ACTIONS
    masked = jnp.where(is_logit, heads, -jnp.inf)
    m = jnp.max(masked, axis=-1, keepdims=True)
    e = jnp.where(is_logit, jnp.exp(masked - m), 0.0)
    denom = jnp.sum(e, axis=-1, keepdims=True)
    probs = e * pl.reciprocal(denom, approx=False)

    # lane-dense output slab: [probs | value | passthrough zeros]
    out_ref[...] = jnp.where(is_logit, probs, heads)


def pack_params(params):
    """Pack 6 small tensors into 2 arrays: (16,128) small-params + (128,128) heads."""
    w1, b1, wa, ba, wv, bv = params
    bh = jnp.zeros((HIDDEN,), jnp.float32)
    bh = bh.at[0:N_ACTIONS].set(ba.reshape(-1))
    bh = bh.at[N_ACTIONS].set(bv.reshape(-1)[0])

    wp = jnp.zeros((PACK_ROWS, HIDDEN), jnp.float32)
    wp = wp.at[0:IN_DIM, :].set(w1)
    wp = wp.at[IN_DIM, :].set(b1.reshape(-1))
    wp = wp.at[IN_DIM + 1, :].set(bh)

    wh = jnp.zeros((HIDDEN, HIDDEN), jnp.float32)
    wh = wh.at[:, 0:N_ACTIONS].set(wa)
    wh = wh.at[:, N_ACTIONS].set(wv.reshape(-1))
    return wp, wh


def policy_forward(x, params, block_b=512):
    """x: (B, 8) float32. Returns (action_prob (B,4), state_values (B,1))."""
    B = x.shape[0]
    wp, wh = pack_params(params)

    # batch tile: multiple of 8, capped so x/out blocks stay well inside
    # v7x's 64 MiB VMEM (x pads to 128 lanes per row in VMEM).
    b_pad = ((B + 7) // 8) * 8
    tb = max(8, (min(block_b, b_pad) // 8) * 8)
    b_pad = ((b_pad + tb - 1) // tb) * tb
    if b_pad != B:
        x = jnp.pad(x, ((0, b_pad - B), (0, 0)))

    out = pl.pallas_call(
        policy_kernel,
        out_shape=jax.ShapeDtypeStruct((b_pad, HIDDEN), jnp.float32),
        grid=(b_pad // tb,),
        in_specs=[
            pl.BlockSpec((tb, IN_DIM), lambda i: (i, 0)),          # x: batched
            pl.BlockSpec((PACK_ROWS, HIDDEN), lambda i: (0, 0)),   # resident
            pl.BlockSpec((HIDDEN, HIDDEN), lambda i: (0, 0)),      # resident
        ],
        out_specs=pl.BlockSpec((tb, HIDDEN), lambda i: (i, 0)),
        compiler_params=pltpu.CompilerParams(
            dimension_semantics=("parallel",)),  # use both TCs on v7x
    )(x, wp, wh)

    return out[:B, 0:N_ACTIONS], out[:B, N_ACTIONS:N_ACTIONS + 1]


def init_params(key):
    """Deterministic synthetic init (PyTorch-Linear-style uniform bounds)."""
    k1, k2, k3, k4, k5, k6 = jax.random.split(key, 6)

    def lin(kw, kb, fan_in, fan_out):
        bound = 1.0 / jnp.sqrt(jnp.float32(fan_in))
        # stored transposed vs. PyTorch: (in, out)
        w = jax.random.uniform(kw, (fan_in, fan_out), jnp.float32, -bound, bound)
        b = jax.random.uniform(kb, (1, fan_out), jnp.float32, -bound, bound)
        return w, b

    w1, b1 = lin(k1, k2, IN_DIM, HIDDEN)
    wa, ba = lin(k3, k4, HIDDEN, N_ACTIONS)
    wv, bv = lin(k5, k6, HIDDEN, 1)
    return (w1, b1, wa, ba, wv, bv)


def reference_forward(x, params):
    """Pure-JAX reference for correctness checking."""
    w1, b1, wa, ba, wv, bv = params
    h = jax.nn.relu(x @ w1 + b1)
    return jax.nn.softmax(h @ wa + ba, axis=-1), h @ wv + bv


if __name__ == "__main__":
    key = jax.random.PRNGKey(0)
    kx, kp = jax.random.split(key)

    B = 8
    x = jax.random.normal(kx, (B, IN_DIM), jnp.float32)
    params = init_params(kp)

    prob, value = policy_forward(x, params)
    prob, value = jax.block_until_ready((prob, value))

    ref_prob, ref_value = reference_forward(x, params)
    assert prob.shape == (B, N_ACTIONS) and value.shape == (B, 1)
    assert jnp.allclose(prob, ref_prob, atol=1e-5, rtol=1e-5)
    assert jnp.allclose(value, ref_value, atol=1e-5, rtol=1e-5)
    assert jnp.allclose(jnp.sum(prob, axis=-1), 1.0, atol=1e-5)

    print("KERNEL_OK")
</pallas_src>

<mosaic_0001>
module attributes {stable_mosaic.version = 11 : i64} {
  func.func @policy_kernel(%arg0: i32, %arg1: memref<8x8xf32, #tpu.memory_space<vmem>>, %arg2: memref<16x128xf32, #tpu.memory_space<vmem>>, %arg3: memref<128x128xf32, #tpu.memory_space<vmem>>, %arg4: memref<8x128xf32, #tpu.memory_space<vmem>>) attributes {dimension_semantics = [#tpu.dimension_semantics<parallel>], iteration_bounds = array<i64: 1>, scalar_prefetch = 0 : i64, scratch_operands = 0 : i64, tpu.core_type = #tpu.core_type<tc>, window_params = [{transform_indices = @transform_0, window_bounds = array<i64: 8, 8>}, {pipeline_mode = #tpu.pipeline_mode<synchronous>, transform_indices = @transform_1, window_bounds = array<i64: 16, 128>}, {pipeline_mode = #tpu.pipeline_mode<synchronous>, transform_indices = @transform_2, window_bounds = array<i64: 128, 128>}, {transform_indices = @transform_3, window_bounds = array<i64: 8, 128>}]} {
    %c0 = arith.constant 0 : index
    %c0_0 = arith.constant 0 : index
    %0 = vector.load %arg1[%c0, %c0_0] : memref<8x8xf32, #tpu.memory_space<vmem>>, vector<8x8xf32>
    %c0_1 = arith.constant 0 : index
    %c0_2 = arith.constant 0 : index
    %1 = vector.load %arg2[%c0_1, %c0_2] : memref<16x128xf32, #tpu.memory_space<vmem>>, vector<8x128xf32>
    %c8 = arith.constant 8 : index
    %c0_3 = arith.constant 0 : index
    %2 = vector.load %arg2[%c8, %c0_3] : memref<16x128xf32, #tpu.memory_space<vmem>>, vector<1x128xf32>
    %c9 = arith.constant 9 : index
    %c0_4 = arith.constant 0 : index
    %3 = vector.load %arg2[%c9, %c0_4] : memref<16x128xf32, #tpu.memory_space<vmem>>, vector<1x128xf32>
    %cst = arith.constant dense<0.000000e+00> : vector<8x128xf32>
    %4 = tpu.matmul %0, %1, %cst {dimension_numbers = #tpu.dot_dimension_numbers<[1], [0], [0], [1], [0, 0, 1, 1], [], []>} : vector<8x8xf32>, vector<8x128xf32>, vector<8x128xf32> -> vector<8x128xf32>
    %5 = vector.broadcast %2 : vector<1x128xf32> to vector<8x128xf32>
    %6 = arith.addf %4, %5 : vector<8x128xf32>
    %cst_5 = arith.constant 0.000000e+00 : f32
    %7 = vector.broadcast %cst_5 : f32 to vector<8x128xf32>
    %8 = arith.maximumf %6, %7 : vector<8x128xf32>
    %c0_6 = arith.constant 0 : index
    %c0_7 = arith.constant 0 : index
    %9 = vector.load %arg3[%c0_6, %c0_7] : memref<128x128xf32, #tpu.memory_space<vmem>>, vector<128x128xf32>
    %cst_8 = arith.constant dense<0.000000e+00> : vector<8x128xf32>
    %10 = tpu.matmul %8, %9, %cst_8 {dimension_numbers = #tpu.dot_dimension_numbers<[1], [0], [0], [1], [0, 0, 1, 1], [], []>} : vector<8x128xf32>, vector<128x128xf32>, vector<8x128xf32> -> vector<8x128xf32>
    %11 = vector.broadcast %3 : vector<1x128xf32> to vector<8x128xf32>
    %12 = arith.addf %10, %11 : vector<8x128xf32>
    %13 = tpu.iota {dimensions = array<i32: 1>} : vector<8x128xi32>
    %c4_i32 = arith.constant 4 : i32
    %14 = vector.broadcast %c4_i32 : i32 to vector<8x128xi32>
    %15 = arith.cmpi slt, %13, %14 : vector<8x128xi32>
    %cst_9 = arith.constant 0xFF800000 : f32
    %16 = vector.broadcast %cst_9 : f32 to vector<8x128xf32>
    %17 = arith.select %15, %12, %16 : vector<8x128xi1>, vector<8x128xf32>
    %cst_10 = arith.constant dense<0xFF800000> : vector<8xf32>
    %18 = vector.multi_reduction <maximumf>, %17, %cst_10 [1] : vector<8x128xf32> to vector<8xf32>
    %19 = vector.shape_cast %18 : vector<8xf32> to vector<8x1xf32>
    %20 = vector.broadcast %19 : vector<8x1xf32> to vector<8x128xf32>
    %21 = arith.subf %17, %20 : vector<8x128xf32>
    %22 = math.exp %21 : vector<8x128xf32>
    %cst_11 = arith.constant 0.000000e+00 : f32
    %23 = vector.broadcast %cst_11 : f32 to vector<8x128xf32>
    %24 = arith.select %15, %22, %23 : vector<8x128xi1>, vector<8x128xf32>
    %cst_12 = arith.constant dense<0.000000e+00> : vector<8xf32>
    %25 = vector.multi_reduction <add>, %24, %cst_12 [1] : vector<8x128xf32> to vector<8xf32>
    %26 = vector.shape_cast %25 : vector<8xf32> to vector<8x1xf32>
    %27 = tpu.reciprocal %26 : vector<8x1xf32> -> vector<8x1xf32>
    %28 = vector.broadcast %27 : vector<8x1xf32> to vector<8x128xf32>
    %29 = arith.mulf %24, %28 : vector<8x128xf32>
    %30 = arith.select %15, %29, %12 : vector<8x128xi1>, vector<8x128xf32>
    %c0_13 = arith.constant 0 : index
    %c0_14 = arith.constant 0 : index
    %31 = vector.load %arg4[%c0_13, %c0_14] : memref<8x128xf32, #tpu.memory_space<vmem>>, vector<8x128xf32>
    tpu.vector_store %arg4[%c0_13, %c0_14], %30 {strides = array<i32>} : memref<8x128xf32, #tpu.memory_space<vmem>>, vector<8x128xf32>,
    return
  }
  func.func @transform_0(%arg0: i32) -> (i32, i32) {
    %c0_i32 = arith.constant 0 : i32
    %c0_i32_0 = arith.constant 0 : i32
    return %arg0, %c0_i32 : i32, i32
  }
  func.func @transform_1(%arg0: i32) -> (i32, i32) {
    %c0_i32 = arith.constant 0 : i32
    %c0_i32_0 = arith.constant 0 : i32
    %c0_i32_1 = arith.constant 0 : i32
    return %c0_i32, %c0_i32_0 : i32, i32
  }
  func.func @transform_2(%arg0: i32) -> (i32, i32) {
    %c0_i32 = arith.constant 0 : i32
    %c0_i32_0 = arith.constant 0 : i32
    %c0_i32_1 = arith.constant 0 : i32
    return %c0_i32, %c0_i32_0 : i32, i32
  }
  func.func @transform_3(%arg0: i32) -> (i32, i32) {
    %c0_i32 = arith.constant 0 : i32
    %c0_i32_0 = arith.constant 0 : i32
    return %arg0, %c0_i32 : i32, i32
  }
}

</mosaic_0001>

<bundles_post_ra>
// kernel: tpu_custom_call.1
= control target key start
LH: loop header
LB: loop body
LE: loop exit
PB: predicated region body
PF: predicated region fallthrough
CT: control target
= control target key end

     0   :  { %8 = vsyncpa [#allocation3], 0  ;;  %s330_s0 = inlined_call_operand.hbm [shape: f32[8,8], index: 0, kind: input, shape index: {}]   ;;  %s331_s1 = inlined_call_operand.hbm [shape: f32[16,128], index: 1, kind: input, shape index: {}]   ;;  %s332_s2 = inlined_call_operand.hbm [shape: f32[128,128], index: 2, kind: input, shape index: {}]   ;;  %s333_s3 = inlined_call_operand.hbm [shape: f32[8,128], index: 3, kind: output, shape index: {}]  }
   0x1   :  { %9 = vsyncpa [#allocation6], 0  ;;  %s26_s14 = sshll.u32 %s331_s1, 4  ;;  %s27_s14 = int_to_ptr.hbm [resolvable:$true] %s26_s14 }
   0x2   :  { %10 = vsyncpa [#allocation4], 0  ;;  %s289_s15 = smov [#allocation5]   ;;  %s16_s19 = sshll.u32 %s330_s0, 4  ;;  %s17_s19 = int_to_ptr.hbm [resolvable:$true] %s16_s19 }
   0x3   :  { %s28_s16 = sshll.u32 %s289_s15, 4  ;;  %s290_s20 = smov 128   ;;  %s29_s16 = int_to_ptr.vmem [resolvable:$true] %s28_s16 }
   0x4   :  { %s291_s21 = smov 8   ;;  %s292_s22 = smov [#allocation2]  }
   0x5   :  { %34 = dma.hbm_to_vmem [thread:$0]  %s27_s14, 256, %s29_s16, [#allocation6], %s290_s20, %s290_s20, %s291_s21  }
   0x6   :  { %s18_s23 = sshll.u32 %s292_s22, 4  ;;  %s39_s26 = sshll.u32 %s332_s2, 4  ;;  %s19_s23 = int_to_ptr.vmem [resolvable:$true] %s18_s23  ;;  %s40_s26 = int_to_ptr.hbm [resolvable:$true] %s39_s26 }
   0x7   :  { %21 = dma.hbm_to_vmem [thread:$0]  %s17_s19, 128, %s19_s23, [#allocation3]  }
   0x8   :  { %s293_s1 = smov [#allocation7]  }
   0x9   :  { %s41_s27 = sshll.u32 %s293_s1, 4  ;;  %s42_s27 = int_to_ptr.vmem [resolvable:$true] %s41_s27 }
   0xa   :  { %47 = dma.hbm_to_vmem [thread:$0]  %s40_s26, 2048, %s42_s27, [#allocation6], %s290_s20, %s290_s20, %s291_s21  }
   0xb   :  { %283 = dma.done.wait [#allocation3], 128  }
   0xc   :  { %284 = vsyncadd [#allocation3], 4294967168 }
   0xd   :  { %285 = dma.done.wait [#allocation6], 2304  }
   0xe   :  { %286 = vsyncadd [#allocation6], 4294964992  ;;  %vm65_vm0 = vcmask 64512   ;;  %v61_v0 = vld [vmem:[#allocation5] sm:$0xff]  ;;  %v60_v1 = vld [vmem:[#allocation2] sm:$0xff]  ;;  %v127_v22 = vlaneseq  ;;  %s294_s0 = smov [#allocation8]  }
   0xf   :  { %v105_v2 = vld [vmem:[#allocation7 + $0x78] sm:$0xff]  ;;  %84 = vmatpush.msra.mxu0 %v61_v0  ;;  %v104_v3 = vld [vmem:[#allocation7 + $0x70] sm:$0xff]  ;;  %v103_v4 = vld [vmem:[#allocation7 + $0x68] sm:$0xff]  ;;  %s161_s2 = sshll.u32 %s294_s0, 4  ;;  %s163_s30 = sshll.u32 %s333_s3, 4  ;;  %s162_s2 = int_to_ptr.vmem [resolvable:$true] %s161_s2  ;;  %s164_s30 = int_to_ptr.hbm [resolvable:$true] %s163_s30 }
  0x10   :  { %107 = vmatpush.msra.mxu1 %v105_v2  ;;  %174 = vmatmul.msk.f32.vlgmr.msra.gmra.mxu0 %vm65_vm0, %v60_v1  ;;  %v102_v5 = vld [vmem:[#allocation7 + $0x60] sm:$0xff]  ;;  %v101_v6 = vld [vmem:[#allocation7 + $0x58] sm:$0xff]  ;;  %v100_v7 = vld [vmem:[#allocation7 + $0x50] sm:$0xff]  ;;  %v128_v23 = vand.u32 127, %v127_v22 }
  0x11   :  { %v99_v8 = vld [vmem:[#allocation7 + $0x48] sm:$0xff]  ;;  %v98_v9 = vld [vmem:[#allocation7 + $0x40] sm:$0xff]  ;;  %v97_v10 = vld [vmem:[#allocation7 + $0x38] sm:$0xff] }
  0x12   :  { %108 = vmatpush.msra.mxu1 %v104_v3  ;;  %v96_v11 = vld [vmem:[#allocation7 + $0x30] sm:$0xff]  ;;  %v95_v12 = vld [vmem:[#allocation7 + $0x28] sm:$0xff]  ;;  %v94_v13 = vld [vmem:[#allocation7 + $0x20] sm:$0xff]  ;;  %vm129_vm1 = vcmp.lt.s32.totalorder %v128_v23, 4 }
  0x13   :  { %v93_v14 = vld [vmem:[#allocation7 + $0x18] sm:$0xff]  ;;  %v92_v15 = vld [vmem:[#allocation7 + $0x10] sm:$0xff]  ;;  %v91_v16 = vld [vmem:[#allocation7 + $0x8] sm:$0xff] }
  0x14   :  { %109 = vmatpush.msra.mxu1 %v103_v4  ;;  %v90_v17 = vld [vmem:[#allocation7] sm:$0xff]  ;;  %v181_v18 = vld [vmem:[#allocation5 + $0x8] ss:$0 sm:$0xff]  ;;  %v182_v24 = vld [vmem:[#allocation5 + $0x9] ss:$0 sm:$0xff] }
  0x16   :  { %110 = vmatpush.msra.mxu1 %v102_v5 }
  0x18   :  { %111 = vmatpush.msra.mxu1 %v101_v6 }
  0x1a   :  { %112 = vmatpush.msra.mxu1 %v100_v7 }
  0x1c   :  { %113 = vmatpush.msra.mxu1 %v99_v8 }
  0x1e   :  { %114 = vmatpush.msra.mxu1 %v98_v9 }
  0x20   :  { %115 = vmatpush.msra.mxu1 %v97_v10 }
  0x22   :  { %116 = vmatpush.msra.mxu1 %v96_v11 }
  0x24   :  { %117 = vmatpush.msra.mxu1 %v95_v12 }
  0x26   :  { %118 = vmatpush.msra.mxu1 %v94_v13 }
  0x28   :  { %119 = vmatpush.msra.mxu1 %v93_v14 }
  0x2a   :  { %120 = vmatpush.msra.mxu1 %v92_v15 }
  0x2c   :  { %121 = vmatpush.msra.mxu1 %v91_v16 }
  0x2e   :  { %122 = vmatpush.msra.mxu1 %v90_v17 }
  0x8d   :  { %v86_v19 = vpop.f32.mrf.mxu0 }
  0x8e   :  { %v87_v20 = vadd.f32 %v181_v18, %v86_v19 }
  0x90   :  { %v89_v21 = vmax.f32 %v87_v20, 0.0 }
  0x92   :  { %123 = vmatmul.f32.vlgmr.msra.gmra.mxu1 %v89_v21 }
 0x10f   :  { %v124_v25 = vpop.f32.mrf.mxu1 }
 0x110   :  { %v125_v26 = vadd.f32 %v182_v24, %v124_v25 }
 0x112   :  { %v130_v27 = vsel %vm129_vm1, %v125_v26, -inf }
 0x113   :  { %131 = vmax.xlane.f32.xlu0 %v130_v27 }
 0x186   :  { %v132_v28 = vpop.xlane.xlu0 %131 }
 0x187   :  { %v133_v29 = vsub.f32 %v130_v27, %v132_v28 }
 0x189   :  { %v134_v30 = vmul.f32 1.442695, %v133_v29 }
 0x18b   :  { %183 = vpow2.f32 %v134_v30 }
 0x191   :  { %v184_v31 = vpop.eup %183 }
 0x192   :  { %v136_v32 = vsel %vm129_vm1, %v184_v31, 0.0 }
 0x193   :  { %137 = vadd.xlane.f32.xlu0 %v136_v32 }
 0x206   :  { %v138_v33 = vpop.xlane.xlu0 %137 }
 0x207   :  { %185 = vrcp.f32 %v138_v33  ;;  %v150_v37 = vand.u32 2147483648, %v138_v33  ;;  %v148_v39 = vand.u32 2147483647, %v138_v33  ;;  %vm144_vm3 = vweird.f32 %v138_v33 }
 0x209   :  { %v151_v41 = vor.u32 1.1754944e-38, %v150_v37  ;;  %vm149_vm5 = vcmp.eq.f32.partialorder %v148_v39, 8.507059e+37 }
 0x20d   :  { %v186_v34 = vpop.eup %185 }
 0x20e   :  { %v140_v35 = vmul.f32 %v186_v34, %v138_v33  ;;  %vm145_vm2 = vweird.f32 %v186_v34 }
 0x20f   :  { %vm146_vm4 = vmor %vm144_vm3, %vm145_vm2 }
 0x210   :  { %v141_v36 = vsub.f32 1.0, %v140_v35 }
 0x212   :  { %v142_v38 = vmul.f32 %v186_v34, %v141_v36 }
 0x214   :  { %v143_v40 = vadd.f32 %v186_v34, %v142_v38 }
 0x216   :  { %v147_v42 = vsel %vm146_vm4, %v186_v34, %v143_v40 }
 0x217   :  { %v152_v43 = vsel %vm149_vm5, %v151_v41, %v147_v42 }
 0x218   :  { %v153_v44 = vmul.f32 %v152_v43, %v136_v32 }
 0x21a   :  { %v154_v45 = vsel %vm129_vm1, %v153_v44, %v125_v26 }
 0x21b   :  { %155 = vst [vmem:[#allocation8] sm:$0xff] %v154_v45 }
 0x21c   :  { %166 = dma.vmem_to_hbm [thread:$0]  %s162_s2, 128, %s164_s30, [#allocation4]  }
 0x21d   :  { %287 = dma.done.wait [#allocation4], 128  }
 0x21e   :  { %288 = vsyncadd [#allocation4], 4294967168 }
 0x21f   :  { %171 = vsyncpa [#allocation3], 1 }
 0x220   :  { %172 = vsyncpa [#allocation6], 1 }
 0x221   :  { %173 = vsyncpa [#allocation4], 1 }

</bundles_post_ra>
